<compile_context>
chip_gen: v7x
topology: tpu7x:2x2x1
jax: 0.10.0
libtpu: 0.0.40
codegen_flags: <defaults>
</compile_context>

<pallas_src>
import jax
import jax.numpy as jnp
import numpy as np
from jax.experimental import pallas as pl
from jax.experimental.pallas import tpu as pltpu


def _copy_kernel(x_ref, out_ref):
    # Input BlockSpec already windows the kept columns: pure copy.
    out_ref[...] = x_ref[...]


def _chomp_kernel(x_ref, out_ref):
    # Kept length not lane-aligned: load full rows, statically slice prefix.
    out_ref[...] = x_ref[:, : out_ref.shape[-1]]


# VMEM budgets (leave headroom under the 32 MiB scoped default).
_VMEM_BUDGET_BYTES = 24 * 1024 * 1024   # for picking the row tile (gridded path)
_SMALL_VMEM_BYTES = 4 * 1024 * 1024     # below this -> gridless single-shot copy


def _round_down_mult(x, m):
    return max(m, (x // m) * m)


def chomp1d(x, chomp_size, _force_grid=False):
    """Pallas equivalent of Chomp1d: x[:, :, :-chomp_size].contiguous()."""
    assert chomp_size > 0
    B, C, L = x.shape
    L_out = L - chomp_size
    assert L_out > 0
    rows = B * C
    x2 = x.reshape(rows, L)              # collapse leading dims -> sublane axis
    out_shape = jax.ShapeDtypeStruct((rows, L_out), x.dtype)

    itemsize = jnp.dtype(x.dtype).itemsize
    total_bytes = rows * (L + L_out) * itemsize

    if (total_bytes <= _SMALL_VMEM_BYTES or rows < 8) and not _force_grid:
        # Small input: gridless call, whole arrays in VMEM, one in-DMA +
        # one out-DMA, no pipeline bookkeeping.
        out2 = pl.pallas_call(
            _chomp_kernel,
            out_shape=out_shape,
            in_specs=[pl.BlockSpec(memory_space=pltpu.MemorySpace.VMEM)],
            out_specs=pl.BlockSpec(memory_space=pltpu.MemorySpace.VMEM),
        )(x2)
        return out2.reshape(B, C, L_out)

    # ---------- Gridded path: 1-D parallel grid over row tiles ----------
    lane_aligned = (L_out % 128 == 0)
    in_cols = L_out if lane_aligned else L        # skip reading chomped tail if we can
    kernel = _copy_kernel if lane_aligned else _chomp_kernel

    # Largest row tile (multiple of 8 sublanes) whose double-buffered
    # in+out tiles fit the VMEM budget.
    bytes_per_row = (in_cols + L_out) * itemsize * 2   # x2 for double buffering
    row_tile = _round_down_mult(_VMEM_BUDGET_BYTES // max(bytes_per_row, 1), 8)
    row_tile = min(row_tile, _round_down_mult(rows, 8))
    row_tile = max(row_tile, 8)

    grid = (pl.cdiv(rows, row_tile),)
    out2 = pl.pallas_call(
        kernel,
        out_shape=out_shape,
        grid=grid,
        in_specs=[pl.BlockSpec((row_tile, in_cols), lambda i: (i, 0))],
        out_specs=pl.BlockSpec((row_tile, L_out), lambda i: (i, 0)),
        compiler_params=pltpu.CompilerParams(
            dimension_semantics=("parallel",),
            vmem_limit_bytes=64 * 1024 * 1024,
        ),
    )(x2)
    return out2.reshape(B, C, L_out)


if __name__ == "__main__":
    key = jax.random.PRNGKey(0)
    k1, k2, k3 = jax.random.split(key, 3)

    # Small shapes implied by the module: [batch, channels, length] conv output.
    B, C, L, CHOMP = 2, 4, 16, 3
    x = jax.random.normal(k1, (B, C, L), jnp.float32)
    out = jax.block_until_ready(chomp1d(x, CHOMP))
    np.testing.assert_allclose(np.asarray(out), np.asarray(x[:, :, :-CHOMP]),
                               rtol=0, atol=0)

    # Gridded path, lane-aligned kept length (L_out = 128): pure-copy kernel,
    # chomped tail never read from HBM.
    B2, C2, L2, CHOMP2 = 2, 8, 160, 32
    x2 = jax.random.normal(k2, (B2, C2, L2), jnp.float32)
    out2 = jax.block_until_ready(chomp1d(x2, CHOMP2, _force_grid=True))
    np.testing.assert_allclose(np.asarray(out2), np.asarray(x2[:, :, :-CHOMP2]),
                               rtol=0, atol=0)

    # Gridded path, non-aligned kept length: prefix-slice kernel.
    B3, C3, L3, CHOMP3 = 4, 16, 200, 8
    x3 = jax.random.normal(k3, (B3, C3, L3), jnp.float32)
    out3 = jax.block_until_ready(chomp1d(x3, CHOMP3, _force_grid=True))
    np.testing.assert_allclose(np.asarray(out3), np.asarray(x3[:, :, :-CHOMP3]),
                               rtol=0, atol=0)

    print("KERNEL_OK")
</pallas_src>

<mosaic_0001>
module attributes {stable_mosaic.version = 11 : i64} {
  func.func @_chomp_kernel(%arg0: memref<8x16xf32, #tpu.memory_space<vmem>>, %arg1: memref<8x13xf32, #tpu.memory_space<vmem>>) attributes {dimension_semantics = [], scalar_prefetch = 0 : i64, scratch_operands = 0 : i64, tpu.core_type = #tpu.core_type<tc>} {
    %c0 = arith.constant 0 : index
    %c0_0 = arith.constant 0 : index
    %0 = vector.load %arg0[%c0, %c0_0] : memref<8x16xf32, #tpu.memory_space<vmem>>, vector<8x13xf32>
    %c0_1 = arith.constant 0 : index
    %c0_2 = arith.constant 0 : index
    %1 = vector.load %arg1[%c0_1, %c0_2] : memref<8x13xf32, #tpu.memory_space<vmem>>, vector<8x13xf32>
    tpu.vector_store %arg1[%c0_1, %c0_2], %0 {strides = array<i32>} : memref<8x13xf32, #tpu.memory_space<vmem>>, vector<8x13xf32>,
    return
  }
}

</mosaic_0001>

<bundles_post_ra>
// kernel: tpu_custom_call.1
= control target key start
LH: loop header
LB: loop body
LE: loop exit
PB: predicated region body
PF: predicated region fallthrough
CT: control target
= control target key end

     0   :  { %6 = vsyncpa [#allocation3], 0  ;;  %s125_s0 = inlined_call_operand.hbm [shape: f32[8,16], index: 0, kind: input, shape index: {}]   ;;  %s126_s1 = inlined_call_operand.hbm [shape: f32[8,13], index: 1, kind: output, shape index: {}]  }
   0x1   :  { %7 = vsyncpa [#allocation4], 0  ;;  %s89_s6 = smov [#allocation2]   ;;  %s41_s10 = scalar_lea.hbm %s125_s0, 128 }
   0x2   :  { %s14_s7 = sshll.u32 %s89_s6, 4  ;;  %p42_p0 = scmp.ne.s32.totalorder %s125_s0, %s41_s10  ;;  %s15_s7 = int_to_ptr.vmem [resolvable:$true] %s14_s7 }
   0x3   :  { %p45_p1 = scmp.lt.u32.totalorder %s41_s10, %s125_s0 }
   0x5   :  { %p47_p2 = pnand %p45_p1, %p42_p0 }
   0x7   :  { %50 = shalt.err (!%p47_p2)
}
   0x8   :  { %s51_s15 = scalar_lea.vmem %s15_s7, 128  ;;  %p56_p4 = scmp.lt.s32.totalorder %s15_s7, %s15_s7 }
   0x9   :  { %p52_p3 = scmp.ne.s32.totalorder %s15_s7, %s51_s15  ;;  %p57_p5 = scmp.lt.s32.totalorder %s51_s15, %s51_s15 }
   0xb   :  { %p58_p6 = por %p57_p5, %p56_p4 }
   0xd   :  { %p59_p7 = pnand %p58_p6, %p52_p3 }
   0xf   :  { %62 = shalt.err (!%p59_p7)
}
  0x10   :  { %17 = dma.hbm_to_vmem [thread:$0]  %s125_s0, 128, %s15_s7, [#allocation3]  }
  0x11   :  { %85 = dma.done.wait [#allocation3], 128  }
  0x12   :  { %86 = vsyncadd [#allocation3], 4294967168  ;;  %s90_s18 = smov [#allocation5]   ;;  %vm22_vm0 = vcmask 105472   ;;  %v21_v0 = vld [vmem:[#allocation2] sm:$0xff] }
  0x13   :  { %s30_s19 = sshll.u32 %s90_s18, 4  ;;  %23 = vst.msk [vmem:[#allocation5] sm:$0xff] %vm22_vm0, %v21_v0  ;;  %s31_s19 = int_to_ptr.vmem [resolvable:$true] %s30_s19 }
  0x14   :  { %s63_s20 = scalar_lea.vmem %s31_s19, 128  ;;  %p68_p9 = scmp.lt.s32.totalorder %s31_s19, %s31_s19 }
  0x15   :  { %p64_p8 = scmp.ne.s32.totalorder %s31_s19, %s63_s20  ;;  %p69_p10 = scmp.lt.s32.totalorder %s63_s20, %s63_s20 }
  0x17   :  { %p70_p11 = por %p69_p10, %p68_p9 }
  0x19   :  { %p71_p12 = pnand %p70_p11, %p64_p8 }
  0x1b   :  { %74 = shalt.err (!%p71_p12)
}
  0x1c   :  { %s75_s23 = scalar_lea.hbm %s126_s1, 128 }
  0x1d   :  { %p76_p13 = scmp.ne.s32.totalorder %s126_s1, %s75_s23  ;;  %p79_p0 = scmp.lt.u32.totalorder %s75_s23, %s126_s1 }
  0x1f   :  { %p81_p1 = pnand %p79_p0, %p76_p13 }
  0x21   :  { %84 = shalt.err (!%p81_p1)
}
  0x22   :  { %33 = dma.vmem_to_hbm [thread:$0]  %s31_s19, 128, %s126_s1, [#allocation4]  }
  0x23   :  { %87 = dma.done.wait [#allocation4], 128  }
  0x24   :  { %88 = vsyncadd [#allocation4], 4294967168 }
  0x25   :  { %37 = vsyncpa [#allocation3], 1 }
  0x26   :  { %38 = vsyncpa [#allocation4], 1 }

</bundles_post_ra>
